<compile_context>
chip_gen: v7x
topology: tpu7x:2x2x1
jax: 0.10.0
libtpu: 0.0.40
codegen_flags: <defaults>
</compile_context>

<pallas_src>
import jax
import jax.numpy as jnp
from jax.experimental import pallas as pl
from jax.experimental.pallas import tpu as pltpu

NEG_BIG = -2.0 ** 32.0


def crec_attn_kernel(hist_ref, cand_ref, mask_ref,
                     wq_ref, bq_ref, wkv_ref, bkv_ref, wp_ref, bp_ref,
                     out_ref):
    TB, S, D = hist_ref.shape

    hist = hist_ref[...]                       # (TB, S, D)
    cand = cand_ref[...]                       # (TB, D)
    mask = mask_ref[...]                       # (TB, S)   lane-dense

    # Q linear on the candidate embedding.
    q = jnp.dot(cand, wq_ref[...], preferred_element_type=jnp.float32) + bq_ref[...]   # (TB, D)

    # Fused K|V linear: one (TB*S, D) x (D, 2D) MXU matmul, then slice.
    kv = jnp.dot(hist.reshape(TB * S, D), wkv_ref[...],
                 preferred_element_type=jnp.float32) + bkv_ref[...]                    # (TB*S, 2D)
    kv3 = kv.reshape(TB, S, 2 * D)
    k3 = kv3[:, :, :D]                         # (TB, S, D)
    v3 = kv3[:, :, D:]                         # (TB, S, D)

    # logits[b, s] = sum_d q[b, d] * k[b, s, d]  -- batched MXU matmul, lane-dense output.
    q3 = q.reshape(TB, 1, D)
    logits = jnp.einsum('bqd,bsd->bqs', q3, k3,
                        preferred_element_type=jnp.float32).reshape(TB, S)             # (TB, S)

    # Faithful to the reference masking: logits*mask + logits*(1-mask)*(-2**32).
    # NOTE (review concern): this flips sign for negative masked logits; kept
    # as-is to preserve the original module's semantics.
    logits = logits * mask + logits * (1.0 - mask) * NEG_BIG

    # Softmax over the history axis (last axis -> cheap XLU reduce, EUP exp/rcp).
    m = jnp.max(logits, axis=-1, keepdims=True)                                        # (TB, 1)
    e = jnp.exp(logits - m)                                                            # (TB, S)
    denom = jnp.sum(e, axis=-1, keepdims=True)                                         # (TB, 1)
    scores = e * pl.reciprocal(denom, approx=True)                                     # (TB, S)

    # agg[b, d] = sum_s scores[b, s] * v[b, s, d]  -- batched MXU matmul.
    agg = jnp.einsum('bqs,bsd->bqd', scores.reshape(TB, 1, S), v3,
                     preferred_element_type=jnp.float32).reshape(TB, D)                # (TB, D)

    # Projection linear; the 2-class classifier runs outside the kernel.
    out_ref[...] = jnp.dot(agg, wp_ref[...], preferred_element_type=jnp.float32) + bp_ref[...]


def crec_attention_proj(hist_emb, cand_emb, mask, wq, bq, wkv, bkv, wp, bp, *, tb=128):
    """Fused attention + projection. Returns (B, D) projected aggregation."""
    B, S, D = hist_emb.shape
    TB = B if B <= tb else tb
    pad = (-B) % TB
    if pad:
        hist_emb = jnp.pad(hist_emb, ((0, pad), (0, 0), (0, 0)))
        cand_emb = jnp.pad(cand_emb, ((0, pad), (0, 0)))
        mask = jnp.pad(mask, ((0, pad), (0, 0)))
    Bp = B + pad
    grid = (Bp // TB,)

    # Advisory cost estimate for XLA scheduling.
    flops = 2 * Bp * (D * D            # q linear
                      + S * D * 2 * D  # fused k|v linear
                      + S * D          # q.k logits
                      + S * D          # weighted sum of v
                      + D * D)         # projection
    transcendentals = Bp * (S + 1)
    bytes_accessed = 4 * (Bp * S * D + 2 * Bp * D + Bp * S
                          + 4 * D * D + 4 * D)

    # VMEM budget: double-buffered per-tile I/O + resident weights + headroom.
    tile_bytes = 4 * (TB * S * D + 2 * TB * D + TB * S)
    weight_bytes = 4 * (4 * D * D + 4 * D)
    vmem_limit = int(min(100 << 20, max(16 << 20,
                                        2 * tile_bytes + 2 * weight_bytes + (8 << 20))))

    out = pl.pallas_call(
        crec_attn_kernel,
        out_shape=jax.ShapeDtypeStruct((Bp, D), jnp.float32),
        grid=grid,
        in_specs=[
            pl.BlockSpec((TB, S, D), lambda i: (i, 0, 0)),   # hist_emb  (batch-tiled)
            pl.BlockSpec((TB, D), lambda i: (i, 0)),         # cand_emb  (batch-tiled)
            pl.BlockSpec((TB, S), lambda i: (i, 0)),         # mask      (batch-tiled)
            pl.BlockSpec((D, D), lambda i: (0, 0)),          # wq   (resident)
            pl.BlockSpec((1, D), lambda i: (0, 0)),          # bq
            pl.BlockSpec((D, 2 * D), lambda i: (0, 0)),      # wkv
            pl.BlockSpec((1, 2 * D), lambda i: (0, 0)),      # bkv
            pl.BlockSpec((D, D), lambda i: (0, 0)),          # wp
            pl.BlockSpec((1, D), lambda i: (0, 0)),          # bp
        ],
        out_specs=pl.BlockSpec((TB, D), lambda i: (i, 0)),
        compiler_params=pltpu.CompilerParams(
            dimension_semantics=("parallel",),
            vmem_limit_bytes=vmem_limit),
        cost_estimate=pl.CostEstimate(
            flops=flops, transcendentals=transcendentals,
            bytes_accessed=bytes_accessed),
    )(hist_emb, cand_emb, mask, wq, bq, wkv, bkv, wp, bp)
    return out[:B]


def crec_class_logits(params, hist_seq, cand, *, tb=128):
    """Returns the (B, 2) class logits for the CRec forward."""
    # Embedding row gather done by XLA straight from HBM (no one-hot matmul,
    # vocab table never enters kernel VMEM).  Row 0 is zero (padding_idx=0).
    hist_emb = params["emb"][hist_seq.astype(jnp.int32)]       # (B, S, D)
    cand_emb = params["emb"][cand.astype(jnp.int32)]           # (B, D)
    mask = (hist_seq != 0).astype(jnp.float32)                 # (B, S)   lane-dense

    # Fuse K and V linears into a single (D, 2D) weight for the kernel.
    wkv = jnp.concatenate([params["wk"], params["wv"]], axis=1)    # (D, 2D)
    bkv = jnp.concatenate([params["bk"], params["bv"]], axis=1)    # (1, 2D)

    proj = crec_attention_proj(hist_emb, cand_emb, mask,
                               params["wq"], params["bq"], wkv, bkv,
                               params["wp"], params["bp"], tb=tb)  # (B, D)

    # Tiny 2-class classifier stays in the wrapper (keeps kernel output lane-dense).
    return proj @ params["wc"] + params["bc"][0]                   # (B, 2)


def crec_forward(params, hist_seq, cand, label, task_type="train"):
    cls_logits = crec_class_logits(params, hist_seq, cand)        # (B, 2)
    if task_type == "train":
        # nn.CrossEntropyLoss (mean reduction); torch.mean of a scalar is a no-op.
        logp = jax.nn.log_softmax(cls_logits, axis=1)
        nll = -jnp.take_along_axis(logp, label[:, None].astype(jnp.int32), axis=1)[:, 0]
        return jnp.mean(nll)
    else:
        return jax.nn.softmax(cls_logits, axis=1)[:, 1]


# ------------------ pure-JAX reference (for correctness check) ------------------
def crec_reference_logits(params, hist_seq, cand):
    hist_emb = params["emb"][hist_seq]                            # (B, S, D)
    cand_emb = params["emb"][cand]                                # (B, D)
    mask = (hist_seq != 0).astype(jnp.float32)                    # (B, S)
    q = cand_emb @ params["wq"] + params["bq"][0]
    k = hist_emb @ params["wk"] + params["bk"][0]
    v = hist_emb @ params["wv"] + params["bv"][0]
    logits = jnp.sum(q[:, None, :] * k, axis=2)
    logits = logits * mask + logits * (1.0 - mask) * NEG_BIG
    scores = jax.nn.softmax(logits, axis=1)
    agg = jnp.sum(scores[:, :, None] * v, axis=1)
    proj = agg @ params["wp"] + params["bp"][0]
    return proj @ params["wc"] + params["bc"][0]


def init_params(key, num, dim):
    ks = jax.random.split(key, 12)
    emb = 0.02 * jax.random.normal(ks[0], (num, dim), jnp.float32)
    emb = emb.at[0].set(0.0)                                      # padding_idx = 0
    def lin(kw, kb, d_in, d_out):
        w = 0.1 * jax.random.normal(kw, (d_in, d_out), jnp.float32)
        b = 0.01 * jax.random.normal(kb, (1, d_out), jnp.float32)
        return w, b
    wq, bq = lin(ks[1], ks[2], dim, dim)
    wk, bk = lin(ks[3], ks[4], dim, dim)
    wv, bv = lin(ks[5], ks[6], dim, dim)
    wp, bp = lin(ks[7], ks[8], dim, dim)
    wc, bc = lin(ks[9], ks[10], dim, 2)
    return dict(emb=emb, wq=wq, bq=bq, wk=wk, bk=bk, wv=wv, bv=bv,
                wp=wp, bp=bp, wc=wc, bc=bc)


if __name__ == "__main__":
    key = jax.random.PRNGKey(0)
    kp, k1, k2, k3, k4, k5 = jax.random.split(key, 6)

    # Small smoke-test shapes.
    B, S, D, NUM = 2, 8, 32, 64
    params = init_params(kp, NUM, D)
    hist_seq = jax.random.randint(k1, (B, S), 0, NUM, dtype=jnp.int32)
    hist_seq = hist_seq.at[:, -2:].set(0)                         # some padding positions
    cand = jax.random.randint(k2, (B,), 1, NUM, dtype=jnp.int32)
    label = jax.random.randint(k3, (B,), 0, 2, dtype=jnp.int32)

    # Pallas kernel vs pure-JAX reference on the class logits.
    logits_kernel = jax.block_until_ready(crec_class_logits(params, hist_seq, cand))
    logits_ref = crec_reference_logits(params, hist_seq, cand)
    assert jnp.allclose(logits_kernel, logits_ref, atol=2e-3, rtol=2e-3), (
        logits_kernel, logits_ref)

    # Full forward: train loss and inference prediction paths.
    loss = jax.block_until_ready(crec_forward(params, hist_seq, cand, label, "train"))
    pred = jax.block_until_ready(crec_forward(params, hist_seq, cand, label, "infer"))
    assert loss.shape == () and pred.shape == (B,)

    # Larger batch exercises the batch-tiled grid (TB=128, grid=(2,)) and the
    # "parallel" (megacore) dimension semantics.
    B2 = 256
    hist2 = jax.random.randint(k4, (B2, S), 0, NUM, dtype=jnp.int32)
    hist2 = hist2.at[:, -1:].set(0)
    cand2 = jax.random.randint(k5, (B2,), 1, NUM, dtype=jnp.int32)
    lk2 = jax.block_until_ready(crec_class_logits(params, hist2, cand2))
    lr2 = crec_reference_logits(params, hist2, cand2)
    assert jnp.allclose(lk2, lr2, atol=2e-3, rtol=2e-3)

    print("KERNEL_OK")
</pallas_src>

<mosaic_0001>
module attributes {stable_mosaic.version = 11 : i64} {
  func.func @crec_attn_kernel(%arg0: i32, %arg1: memref<2x8x32xf32, #tpu.memory_space<vmem>>, %arg2: memref<2x32xf32, #tpu.memory_space<vmem>>, %arg3: memref<2x8xf32, #tpu.memory_space<vmem>>, %arg4: memref<32x32xf32, #tpu.memory_space<vmem>>, %arg5: memref<1x32xf32, #tpu.memory_space<vmem>>, %arg6: memref<32x64xf32, #tpu.memory_space<vmem>>, %arg7: memref<1x64xf32, #tpu.memory_space<vmem>>, %arg8: memref<32x32xf32, #tpu.memory_space<vmem>>, %arg9: memref<1x32xf32, #tpu.memory_space<vmem>>, %arg10: memref<2x32xf32, #tpu.memory_space<vmem>>) attributes {dimension_semantics = [#tpu.dimension_semantics<parallel>], iteration_bounds = array<i64: 1>, scalar_prefetch = 0 : i64, scratch_operands = 0 : i64, tpu.core_type = #tpu.core_type<tc>, window_params = [{transform_indices = @transform_0, window_bounds = array<i64: 2, 8, 32>}, {transform_indices = @transform_1, window_bounds = array<i64: 2, 32>}, {transform_indices = @transform_2, window_bounds = array<i64: 2, 8>}, {pipeline_mode = #tpu.pipeline_mode<synchronous>, transform_indices = @transform_3, window_bounds = array<i64: 32, 32>}, {pipeline_mode = #tpu.pipeline_mode<synchronous>, transform_indices = @transform_4, window_bounds = array<i64: 1, 32>}, {pipeline_mode = #tpu.pipeline_mode<synchronous>, transform_indices = @transform_5, window_bounds = array<i64: 32, 64>}, {pipeline_mode = #tpu.pipeline_mode<synchronous>, transform_indices = @transform_6, window_bounds = array<i64: 1, 64>}, {pipeline_mode = #tpu.pipeline_mode<synchronous>, transform_indices = @transform_7, window_bounds = array<i64: 32, 32>}, {pipeline_mode = #tpu.pipeline_mode<synchronous>, transform_indices = @transform_8, window_bounds = array<i64: 1, 32>}, {transform_indices = @transform_9, window_bounds = array<i64: 2, 32>}]} {
    %c0 = arith.constant 0 : index
    %c0_0 = arith.constant 0 : index
    %c0_1 = arith.constant 0 : index
    %0 = vector.load %arg1[%c0, %c0_0, %c0_1] : memref<2x8x32xf32, #tpu.memory_space<vmem>>, vector<2x8x32xf32>
    %c0_2 = arith.constant 0 : index
    %c0_3 = arith.constant 0 : index
    %1 = vector.load %arg2[%c0_2, %c0_3] : memref<2x32xf32, #tpu.memory_space<vmem>>, vector<2x32xf32>
    %c0_4 = arith.constant 0 : index
    %c0_5 = arith.constant 0 : index
    %2 = vector.load %arg3[%c0_4, %c0_5] : memref<2x8xf32, #tpu.memory_space<vmem>>, vector<2x8xf32>
    %c0_6 = arith.constant 0 : index
    %c0_7 = arith.constant 0 : index
    %3 = vector.load %arg4[%c0_6, %c0_7] : memref<32x32xf32, #tpu.memory_space<vmem>>, vector<32x32xf32>
    %cst = arith.constant dense<0.000000e+00> : vector<2x32xf32>
    %4 = tpu.matmul %1, %3, %cst {dimension_numbers = #tpu.dot_dimension_numbers<[1], [0], [0], [1], [0, 0, 1, 1], [], []>} : vector<2x32xf32>, vector<32x32xf32>, vector<2x32xf32> -> vector<2x32xf32>
    %c0_8 = arith.constant 0 : index
    %c0_9 = arith.constant 0 : index
    %5 = vector.load %arg5[%c0_8, %c0_9] : memref<1x32xf32, #tpu.memory_space<vmem>>, vector<1x32xf32>
    %6 = vector.broadcast %5 : vector<1x32xf32> to vector<2x32xf32>
    %7 = arith.addf %4, %6 : vector<2x32xf32>
    %8 = vector.shape_cast %0 : vector<2x8x32xf32> to vector<16x32xf32>
    %c0_10 = arith.constant 0 : index
    %c0_11 = arith.constant 0 : index
    %9 = vector.load %arg6[%c0_10, %c0_11] : memref<32x64xf32, #tpu.memory_space<vmem>>, vector<32x64xf32>
    %cst_12 = arith.constant dense<0.000000e+00> : vector<16x64xf32>
    %10 = tpu.matmul %8, %9, %cst_12 {dimension_numbers = #tpu.dot_dimension_numbers<[1], [0], [0], [1], [0, 0, 1, 1], [], []>} : vector<16x32xf32>, vector<32x64xf32>, vector<16x64xf32> -> vector<16x64xf32>
    %c0_13 = arith.constant 0 : index
    %c0_14 = arith.constant 0 : index
    %11 = vector.load %arg7[%c0_13, %c0_14] : memref<1x64xf32, #tpu.memory_space<vmem>>, vector<1x64xf32>
    %12 = vector.broadcast %11 : vector<1x64xf32> to vector<16x64xf32>
    %13 = arith.addf %10, %12 : vector<16x64xf32>
    %14 = vector.shape_cast %13 : vector<16x64xf32> to vector<2x8x64xf32>
    %15 = vector.extract_strided_slice %14 {offsets = [0, 0, 0], sizes = [2, 8, 32], strides = [1, 1, 1]} : vector<2x8x64xf32> to vector<2x8x32xf32>
    %16 = vector.extract_strided_slice %14 {offsets = [0, 0, 32], sizes = [2, 8, 32], strides = [1, 1, 1]} : vector<2x8x64xf32> to vector<2x8x32xf32>
    %17 = vector.shape_cast %7 : vector<2x32xf32> to vector<2x1x32xf32>
    "tpu.trace_start"() <{level = 10 : i32, message = "bqd,bsd->bqs"}> : () -> ()
    %cst_15 = arith.constant dense<0.000000e+00> : vector<2x1x8xf32>
    %18 = tpu.matmul %17, %15, %cst_15 {dimension_numbers = #tpu.dot_dimension_numbers<[2], [2], [1], [1], [0, 0, 0, 1, 1, 1], [0], [0]>} : vector<2x1x32xf32>, vector<2x8x32xf32>, vector<2x1x8xf32> -> vector<2x1x8xf32>
    "tpu.trace_stop"() : () -> ()
    %19 = vector.shape_cast %18 : vector<2x1x8xf32> to vector<2x8xf32>
    %20 = arith.mulf %19, %2 : vector<2x8xf32>
    %cst_16 = arith.constant 1.000000e+00 : f32
    %21 = vector.broadcast %cst_16 : f32 to vector<2x8xf32>
    %22 = arith.subf %21, %2 : vector<2x8xf32>
    %23 = arith.mulf %19, %22 : vector<2x8xf32>
    %cst_17 = arith.constant -4.2949673E+9 : f32
    %24 = vector.broadcast %cst_17 : f32 to vector<2x8xf32>
    %25 = arith.mulf %23, %24 : vector<2x8xf32>
    %26 = arith.addf %20, %25 : vector<2x8xf32>
    %cst_18 = arith.constant dense<0xFF800000> : vector<2xf32>
    %27 = vector.multi_reduction <maximumf>, %26, %cst_18 [1] : vector<2x8xf32> to vector<2xf32>
    %28 = vector.shape_cast %27 : vector<2xf32> to vector<2x1xf32>
    %29 = vector.broadcast %28 : vector<2x1xf32> to vector<2x8xf32>
    %30 = arith.subf %26, %29 : vector<2x8xf32>
    %31 = math.exp %30 : vector<2x8xf32>
    %cst_19 = arith.constant dense<0.000000e+00> : vector<2xf32>
    %32 = vector.multi_reduction <add>, %31, %cst_19 [1] : vector<2x8xf32> to vector<2xf32>
    %33 = vector.shape_cast %32 : vector<2xf32> to vector<2x1xf32>
    %34 = tpu.reciprocal %33 {approx = true} : vector<2x1xf32> -> vector<2x1xf32>
    %35 = vector.broadcast %34 : vector<2x1xf32> to vector<2x8xf32>
    %36 = arith.mulf %31, %35 : vector<2x8xf32>
    %37 = vector.shape_cast %36 : vector<2x8xf32> to vector<2x1x8xf32>
    "tpu.trace_start"() <{level = 10 : i32, message = "bqs,bsd->bqd"}> : () -> ()
    %cst_20 = arith.constant dense<0.000000e+00> : vector<2x1x32xf32>
    %38 = tpu.matmul %37, %16, %cst_20 {dimension_numbers = #tpu.dot_dimension_numbers<[2], [1], [1], [2], [0, 0, 0, 1, 1, 2], [0], [0]>} : vector<2x1x8xf32>, vector<2x8x32xf32>, vector<2x1x32xf32> -> vector<2x1x32xf32>
    "tpu.trace_stop"() : () -> ()
    %39 = vector.shape_cast %38 : vector<2x1x32xf32> to vector<2x32xf32>
    %c0_21 = arith.constant 0 : index
    %c0_22 = arith.constant 0 : index
    %40 = vector.load %arg8[%c0_21, %c0_22] : memref<32x32xf32, #tpu.memory_space<vmem>>, vector<32x32xf32>
    %cst_23 = arith.constant dense<0.000000e+00> : vector<2x32xf32>
    %41 = tpu.matmul %39, %40, %cst_23 {dimension_numbers = #tpu.dot_dimension_numbers<[1], [0], [0], [1], [0, 0, 1, 1], [], []>} : vector<2x32xf32>, vector<32x32xf32>, vector<2x32xf32> -> vector<2x32xf32>
    %c0_24 = arith.constant 0 : index
    %c0_25 = arith.constant 0 : index
    %42 = vector.load %arg9[%c0_24, %c0_25] : memref<1x32xf32, #tpu.memory_space<vmem>>, vector<1x32xf32>
    %43 = vector.broadcast %42 : vector<1x32xf32> to vector<2x32xf32>
    %44 = arith.addf %41, %43 : vector<2x32xf32>
    %c0_26 = arith.constant 0 : index
    %c0_27 = arith.constant 0 : index
    %45 = vector.load %arg10[%c0_26, %c0_27] : memref<2x32xf32, #tpu.memory_space<vmem>>, vector<2x32xf32>
    tpu.vector_store %arg10[%c0_26, %c0_27], %44 {strides = array<i32>} : memref<2x32xf32, #tpu.memory_space<vmem>>, vector<2x32xf32>,
    return
  }
  func.func @transform_0(%arg0: i32) -> (i32, i32, i32) {
    %c0_i32 = arith.constant 0 : i32
    %c0_i32_0 = arith.constant 0 : i32
    %c0_i32_1 = arith.constant 0 : i32
    return %arg0, %c0_i32, %c0_i32_0 : i32, i32, i32
  }
  func.func @transform_1(%arg0: i32) -> (i32, i32) {
    %c0_i32 = arith.constant 0 : i32
    %c0_i32_0 = arith.constant 0 : i32
    return %arg0, %c0_i32 : i32, i32
  }
  func.func @transform_2(%arg0: i32) -> (i32, i32) {
    %c0_i32 = arith.constant 0 : i32
    %c0_i32_0 = arith.constant 0 : i32
    return %arg0, %c0_i32 : i32, i32
  }
  func.func @transform_3(%arg0: i32) -> (i32, i32) {
    %c0_i32 = arith.constant 0 : i32
    %c0_i32_0 = arith.constant 0 : i32
    %c0_i32_1 = arith.constant 0 : i32
    return %c0_i32, %c0_i32_0 : i32, i32
  }
  func.func @transform_4(%arg0: i32) -> (i32, i32) {
    %c0_i32 = arith.constant 0 : i32
    %c0_i32_0 = arith.constant 0 : i32
    %c0_i32_1 = arith.constant 0 : i32
    return %c0_i32, %c0_i32_0 : i32, i32
  }
  func.func @transform_5(%arg0: i32) -> (i32, i32) {
    %c0_i32 = arith.constant 0 : i32
    %c0_i32_0 = arith.constant 0 : i32
    %c0_i32_1 = arith.constant 0 : i32
    return %c0_i32, %c0_i32_0 : i32, i32
  }
  func.func @transform_6(%arg0: i32) -> (i32, i32) {
    %c0_i32 = arith.constant 0 : i32
    %c0_i32_0 = arith.constant 0 : i32
    %c0_i32_1 = arith.constant 0 : i32
    return %c0_i32, %c0_i32_0 : i32, i32
  }
  func.func @transform_7(%arg0: i32) -> (i32, i32) {
    %c0_i32 = arith.constant 0 : i32
    %c0_i32_0 = arith.constant 0 : i32
    %c0_i32_1 = arith.constant 0 : i32
    return %c0_i32, %c0_i32_0 : i32, i32
  }
  func.func @transform_8(%arg0: i32) -> (i32, i32) {
    %c0_i32 = arith.constant 0 : i32
    %c0_i32_0 = arith.constant 0 : i32
    %c0_i32_1 = arith.constant 0 : i32
    return %c0_i32, %c0_i32_0 : i32, i32
  }
  func.func @transform_9(%arg0: i32) -> (i32, i32) {
    %c0_i32 = arith.constant 0 : i32
    %c0_i32_0 = arith.constant 0 : i32
    return %arg0, %c0_i32 : i32, i32
  }
}

</mosaic_0001>

<bundles_post_ra>
// kernel: tpu_custom_call.1
= control target key start
LH: loop header
LB: loop body
LE: loop exit
PB: predicated region body
PF: predicated region fallthrough
CT: control target
= control target key end

     0   :  { %14 = vsyncpa [#allocation3], 0  ;;  %s1195_s0 = inlined_call_operand.hbm [shape: f32[2,8,32], index: 0, kind: input, shape index: {}]   ;;  %s1196_s1 = inlined_call_operand.vmem [shape: f32[2,32], index: 1, kind: input, shape index: {}]   ;;  %s1197_s2 = inlined_call_operand.vmem [shape: f32[2,8], index: 2, kind: input, shape index: {}]   ;;  %s1198_s3 = inlined_call_operand.hbm [shape: f32[32,32], index: 3, kind: input, shape index: {}]   ;;  %s1199_s4 = inlined_call_operand.vmem [shape: f32[1,32], index: 4, kind: input, shape index: {}]   ;;  %s1200_s5 = inlined_call_operand.hbm [shape: f32[32,64], index: 5, kind: input, shape index: {}]   ;;  %s1201_s6 = inlined_call_operand.vmem [shape: f32[1,64], index: 6, kind: input, shape index: {}]   ;;  %s1202_s7 = inlined_call_operand.hbm [shape: f32[32,32], index: 7, kind: input, shape index: {}]   ;;  %s1203_s8 = inlined_call_operand.vmem [shape: f32[1,32], index: 8, kind: input, shape index: {}]   ;;  %s1204_s9 = inlined_call_operand.hbm [shape: f32[2,32], index: 9, kind: output, shape index: {}]  }
   0x1   :  { %15 = vsyncpa [#allocation6], 0 }
   0x2   :  { %16 = vsyncpa [#allocation9], 0 }
   0x3   :  { %17 = vsyncpa [#allocation4], 0  ;;  %s999_s30 = smov [#allocation5]   ;;  %s1000_s11 = smov [#allocation2]  }
   0x4   :  { %s39_s10 = sshll.u32 %s999_s30, 4  ;;  %s23_s12 = sshll.u32 %s1000_s11, 4  ;;  %s40_s10 = int_to_ptr.vmem [resolvable:$true] %s39_s10  ;;  %s1061_s12 = int_to_ptr.vmem [resolvable:$true] %s23_s12 }
   0x5   :  { %s881_s15 = scalar_lea.hbm %s1198_s3, 512 }
   0x6   :  { %p882_p0 = scmp.ne.s32.totalorder %s1198_s3, %s881_s15  ;;  %p885_p1 = scmp.lt.u32.totalorder %s881_s15, %s1198_s3 }
   0x8   :  { %p887_p2 = pnand %p885_p1, %p882_p0 }
   0xa   :  { %890 = shalt.err (!%p887_p2)
}
   0xb   :  { %s891_s20 = scalar_lea.vmem %s40_s10, 512  ;;  %p896_p4 = scmp.lt.s32.totalorder %s40_s10, %s40_s10 }
   0xc   :  { %p892_p3 = scmp.ne.s32.totalorder %s40_s10, %s891_s20  ;;  %p897_p5 = scmp.lt.s32.totalorder %s891_s20, %s891_s20 }
   0xe   :  { %p898_p6 = por %p897_p5, %p896_p4 }
  0x10   :  { %p899_p7 = pnand %p898_p6, %p892_p3 }
  0x12   :  { %902 = shalt.err (!%p899_p7)
}
  0x13   :  { %s1001_s21 = smov 128   ;;  %s1002_s22 = smov 8  }
  0x14   :  { %45 = dma.hbm_to_vmem [thread:$0]  %s1198_s3, 512, %s40_s10, [#allocation6], %s1001_s21, %s1001_s21, %s1002_s22  }
  0x15   :  { %s903_s27 = scalar_lea.hbm %s1195_s0, 256 }
  0x16   :  { %p904_p8 = scmp.ne.s32.totalorder %s1195_s0, %s903_s27  ;;  %p907_p9 = scmp.lt.u32.totalorder %s903_s27, %s1195_s0 }
  0x18   :  { %p909_p10 = pnand %p907_p9, %p904_p8 }
  0x1a   :  { %912 = shalt.err (!%p909_p10)
}
  0x1b   :  { %s913_s13 = scalar_lea.vmem %s1061_s12, 256  ;;  %p918_p12 = scmp.lt.s32.totalorder %s1061_s12, %s1061_s12 }
  0x1c   :  { %p914_p11 = scmp.ne.s32.totalorder %s1061_s12, %s913_s13  ;;  %p919_p13 = scmp.lt.s32.totalorder %s913_s13, %s913_s13 }
  0x1e   :  { %p920_p0 = por %p919_p13, %p918_p12 }
  0x20   :  { %p921_p1 = pnand %p920_p0, %p914_p11 }
  0x22   :  { %924 = shalt.err (!%p921_p1)
}
  0x23   :  { %29 = dma.hbm_to_vmem [thread:$0]  %s1195_s0, 256, %s1061_s12, [#allocation3], %s1001_s21, %s1001_s21, %s1002_s22  }
  0x24   :  { %s1003_s14 = smov [#allocation7]   ;;  %s1004_s16 = smov [#allocation8]  }
  0x25   :  { %s53_s15 = sshll.u32 %s1003_s14, 4  ;;  %s67_s17 = sshll.u32 %s1004_s16, 4  ;;  %s54_s15 = int_to_ptr.vmem [resolvable:$true] %s53_s15  ;;  %s1098_s17 = int_to_ptr.vmem [resolvable:$true] %s67_s17 }
  0x26   :  { %s925_s20 = scalar_lea.hbm %s1200_s5, 512 }
  0x27   :  { %p926_p2 = scmp.ne.s32.totalorder %s1200_s5, %s925_s20  ;;  %p929_p3 = scmp.lt.u32.totalorder %s925_s20, %s1200_s5 }
  0x29   :  { %p931_p4 = pnand %p929_p3, %p926_p2 }
  0x2b   :  { %934 = shalt.err (!%p931_p4)
}
  0x2c   :  { %s935_s0 = scalar_lea.vmem %s54_s15, 512  ;;  %p940_p6 = scmp.lt.s32.totalorder %s54_s15, %s54_s15 }
  0x2d   :  { %p936_p5 = scmp.ne.s32.totalorder %s54_s15, %s935_s0  ;;  %p941_p7 = scmp.lt.s32.totalorder %s935_s0, %s935_s0 }
  0x2f   :  { %p942_p8 = por %p941_p7, %p940_p6 }
  0x31   :  { %p943_p9 = pnand %p942_p8, %p936_p5 }
  0x33   :  { %946 = shalt.err (!%p943_p9)
}
  0x34   :  { %59 = dma.hbm_to_vmem [thread:$0]  %s1200_s5, 512, %s54_s15, [#allocation6], %s1001_s21, %s1001_s21, %s1002_s22  }
  0x35   :  { %s947_s30 = scalar_lea.hbm %s1202_s7, 512 }
  0x36   :  { %p948_p10 = scmp.ne.s32.totalorder %s1202_s7, %s947_s30  ;;  %p951_p11 = scmp.lt.u32.totalorder %s947_s30, %s1202_s7 }
  0x38   :  { %p953_p12 = pnand %p951_p11, %p948_p10 }
  0x3a   :  { %956 = shalt.err (!%p953_p12)
}
  0x3b   :  { %s957_s14 = scalar_lea.vmem %s1098_s17, 512  ;;  %p962_p0 = scmp.lt.s32.totalorder %s1098_s17, %s1098_s17 }
  0x3c   :  { %p958_p13 = scmp.ne.s32.totalorder %s1098_s17, %s957_s14  ;;  %p963_p1 = scmp.lt.s32.totalorder %s957_s14, %s957_s14 }
  0x3e   :  { %p964_p2 = por %p963_p1, %p962_p0 }
  0x40   :  { %p965_p3 = pnand %p964_p2, %p958_p13 }
  0x42   :  { %968 = shalt.err (!%p965_p3)
}
  0x43   :  { %73 = dma.hbm_to_vmem [thread:$0]  %s1202_s7, 512, %s1098_s17, [#allocation9], %s1001_s21, %s1001_s21, %s1002_s22  }
  0x44   :  { %991 = dma.done.wait [#allocation3], 256  }
  0x45   :  { %992 = vsyncadd [#allocation3], 4294967040 }
  0x46   :  { %993 = dma.done.wait [#allocation6], 1024  }
  0x47   :  { %994 = vsyncadd [#allocation6], 4294966272 }
  0x48   :  { %995 = dma.done.wait [#allocation9], 512  }
  0x49   :  { %996 = vsyncadd [#allocation9], 4294966784  ;;  %v1005_v0 = vmov 0.0|0.0   ;;  %vm1006_vm0 = vmmov 0   ;;  %v1007_v1 = vmov 0.0   ;;  %v177_v2 = vld [vmem:[#allocation7] sm:$0xff]  ;;  %v273_v19 = vlaneseq }
  0x4a   :  { %843 = vmatprep.subr.bf16.mxu0 %v1005_v0  ;;  %798 = vmatprep.mubr.msk.f32.mxu0 %vm1006_vm0, %v1007_v1  ;;  %v178_v3 = vld [vmem:[#allocation7 + $0x8] sm:$0xff]  ;;  %v92_v4 = vld [vmem:[#allocation5] sm:$0xff]  ;;  %vm103_vm1 = vcmask 261120   ;;  %v179_v7 = vld [vmem:[#allocation7 + $0x10] sm:$0xff]  ;;  %v1008_v17 = vmov 1966171168  }
  0x4b   :  { %v849_v5 = vpack.c.bf16 %v178_v3, %v177_v2  ;;  %v93_v6 = vld [vmem:[#allocation5 + $0x8] sm:$0xff]  ;;  %v180_v8 = vld [vmem:[#allocation7 + $0x18] sm:$0xff]  ;;  %v94_v11 = vld [vmem:[#allocation5 + $0x10] sm:$0xff]  ;;  %v271_v18 = vunpack.c.l.s4 %v1008_v17  ;;  %v274_v21 = vshrl.u32 %v273_v19, 7  ;;  %s1009_s18 = smov 96   ;;  %vm462_vm2 = vcmask 1041409  }
  0x4c   :  { %v844_v9 = vpack.c.bf16 %v93_v6, %v92_v4  ;;  %v853_v10 = vpack.c.bf16 %v180_v8, %v179_v7  ;;  %v95_v12 = vld [vmem:[#allocation5 + $0x18] sm:$0xff]  ;;  %v88_v13 = vld [vmem:[#allocation2] sm:$0xff]  ;;  %vm465_vm3 = vcmask 58368   ;;  %v647_v7 = vld [vmem:[#allocation8] sm:$0xff]  ;;  %vm497_vm4 = vcmask 64512   ;;  %s1010_s20 = smov [#allocation10]  }
  0x4d   :  { %850 = vmatprep.subr.bf16.mxu1 %v849_v5  ;;  %809 = vmatprep.mubr.msk.f32.mxu1 %vm103_vm1, %v88_v13  ;;  %v847_v14 = vpack.c.bf16 %v95_v12, %v94_v11  ;;  %v90_v15 = vld [vmem:[%s1196_s1] sm:$0x3]  ;;  %v89_v16 = vld [vmem:[#allocation2 + $0x8] sm:$0xff]  ;;  %v272_v20 = vunpack.c.0.s8 %v271_v18  ;;  %v648_v8 = vld [vmem:[#allocation8 + $0x8] sm:$0xff]  ;;  %s742_s23 = sshll.u32 %s1010_s20, 4  ;;  %vm734_vm5 = vcmask 254976   ;;  %s743_s23 = int_to_ptr.vmem [resolvable:$true] %s742_s23 }
  0x4e   :  { %845 = vmatpush3.bf16.msra.mxu0 %v844_v9  ;;  %852 = vmatpush3.bf16.msra.mxu1 %v849_v5  ;;  %v753_v22 = vld [vmem:[%s1199_s4] ss:$0 sm:$0xff]  ;;  %s969_s24 = scalar_lea.vmem %s743_s23, 32  ;;  %p974_p5 = scmp.lt.s32.totalorder %s743_s23, %s743_s23 }
  0x4f   :  { %846 = vmatprep.subr.bf16.mxu0 %v1005_v0  ;;  %854 = vmatprep.subr.bf16.mxu1 %v853_v10  ;;  %v755_v23 = vld [vmem:[%s1201_s6] ss:$0 sm:$0xff]  ;;  %v275_v24 = vsub.s32 %v272_v20, %v274_v21  ;;  %p970_p4 = scmp.ne.s32.totalorder %s743_s23, %s969_s24  ;;  %p975_p6 = scmp.lt.s32.totalorder %s969_s24, %s969_s24 }
  0x50   :  { %v91_v38 = vld [vmem:[%s1197_s2] sm:$0x3] }
  0x51   :  { %v448_v39 = vsub.f32 1.0, %v91_v38  ;;  %v443_v44 = vrot.slane %v91_v38, 1  ;;  %p976_p7 = por %p975_p6, %p974_p5 }
  0x52   :  { %848 = vmatpush3.bf16.msra.mxu0 %v847_v14  ;;  %856 = vmatpush3.bf16.msra.mxu1 %v853_v10  ;;  %v858_v10 = vpack.c.bf16 %v648_v8, %v647_v7  ;;  %v649_v14 = vld [vmem:[#allocation8 + $0x10] sm:$0xff] }
  0x53   :  { %812 = vmatprep.subr.mxu1 %v1007_v1  ;;  %822 = vmatprep.subr.mxu0 %v1007_v1  ;;  %v450_v42 = vrot.slane %v448_v39, 1  ;;  %p977_p8 = pnand %p976_p7, %p970_p4 }
  0x55   :  { %799 = vmatmul.mubr.msk.f32.vlgmr.msra.gmra.mrb[0].mxu0 %vm103_vm1, %v90_v15  ;;  %810 = vmatmul.mubr.msk.f32.vlgmr.msra.gmra.mrb[0].mxu1 %vm103_vm1, %v89_v16  ;;  %v650_v15 = vld [vmem:[#allocation8 + $0x18] sm:$0xff] }
  0x56   :  { %814 = vmatprep.mubr.msk.f32.mxu1 %vm1006_vm0, %v1007_v1  ;;  %824 = vmatprep.mubr.msk.f32.mxu0 %vm1006_vm0, %v1007_v1  ;;  %v861_v16 = vpack.c.bf16 %v650_v15, %v649_v14 }
 0x128   :  { %v173_v25 = vpop.f32.mrb[0].mxu0  ;;  %v811_v26 = vpop.f32.mrb[0].mxu1 }
 0x129   :  { %v174_v27 = vadd.f32 %v753_v22, %v173_v25  ;;  %v266_v28 = vadd.f32 %v811_v26, %v755_v23  ;;  %v800_v29 = vpop.f32.mrb[1].mxu0  ;;  %v260_v30 = vpop.f32.mrb[1].mxu1 }
 0x12a   :  { %v261_v31 = vadd.f32 %v755_v23, %v260_v30 }
 0x12b   :  { %v276_v32 = vrot.slane %v174_v27, %v275_v24  ;;  %571 = vrot.lane.b32.xlu1 %v266_v28, %s1009_s18 }
 0x12c   :  { %813 = vmatpush3.xpose.msk.msra.mxu1 %vm103_vm1, %v261_v31 }
 0x12d   :  { %v277_v33 = vcombine.high %v276_v32, %v276_v32  ;;  %v284_v34 = vrot.slane %v276_v32, %v275_v24  ;;  %817 = vmatprep.subr.mxu1 %v1007_v1 }
 0x12f   :  { %494 = vrot.lane.b32.xlu1 %v261_v31, %s1009_s18  ;;  %815 = vmatmul.mubr.msk.f32.vlgmr.msra.gmra.mrb[2].mxu1 %vm103_vm1, %v284_v34  ;;  %v291_v35 = vrot.slane %v277_v33, %v275_v24 }
 0x130   :  { %818 = vmatpush3.xpose.msk.msra.mxu1 %vm103_vm1, %v266_v28  ;;  %819 = vmatprep.mubr.msk.f32.mxu1 %vm1006_vm0, %v1007_v1 }
 0x131   :  { %827 = vmatprep.subr.mxu1 %v1007_v1 }
 0x133   :  { %820 = vmatmul.mubr.msk.f32.vlgmr.msra.gmra.mrb[4].mxu1 %vm103_vm1, %v291_v35 }
 0x134   :  { %829 = vmatprep.mubr.msk.f32.mxu1 %vm1006_vm0, %v1007_v1 }
 0x19d   :  { %v572_v36 = vpop.permute.xlu1 %571 }
 0x19e   :  { %828 = vmatpush3.msra.mxu1 %v572_v36 }
 0x1a1   :  { %v495_v37 = vpop.permute.xlu1 %494 }
 0x1a2   :  { %823 = vmatpush3.msra.mxu0 %v495_v37 }
 0x1a3   :  { %857 = vmatprep.subr.bf16.mxu0 %v1005_v0 }
 0x202   :  { %v363_v40 = vpop.f32.mrb[2].mxu1 }
 0x203   :  { %v816_v41 = vpop.f32.mrb[3].mxu1  ;;  %v453_v43 = vmul.f32 %v448_v39, %v363_v40  ;;  %v446_v51 = vmul.f32 %v363_v40, %v91_v38 }
 0x205   :  { %v455_v48 = vmul.f32 -4.2949673e+09, %v453_v43 }
 0x206   :  { %v438_v45 = vpop.f32.mrb[4].mxu1 }
 0x207   :  { %v454_v46 = vmul.f32 %v450_v42, %v438_v45  ;;  %v821_v47 = vpop.f32.mrb[5].mxu1  ;;  %v447_v49 = vmul.f32 %v443_v44, %v438_v45  ;;  %v457_v53 = vadd.f32 %v455_v48, %v446_v51 }
 0x209   :  { %v456_v50 = vmul.f32 -4.2949673e+09, %v454_v46 }
 0x20b   :  { %v458_v52 = vadd.f32 %v456_v50, %v447_v49 }
 0x20d   :  { %v461_v54 = vrot.slane %v458_v52, 7 }
 0x20f   :  { %v463_v55 = vsel %vm462_vm2, %v461_v54, %v457_v53 }
 0x210   :  { %v466_v56 = vsel %vm465_vm3, %v463_v55, -inf }
 0x211   :  { %467 = vmax.xlane.f32.xlu0 %v466_v56 }
 0x29e   :  { %v468_v57 = vpop.xlane.xlu0 %467 }
 0x29f   :  { %v470_v58 = vrot.slane %v468_v57, 1  ;;  %v473_v59 = vsub.f32 %v457_v53, %v468_v57 }
 0x2a1   :  { %v474_v60 = vsub.f32 %v458_v52, %v470_v58  ;;  %v475_v61 = vmul.f32 1.442695, %v473_v59 }
 0x2a3   :  { %v477_v62 = vmul.f32 1.442695, %v474_v60 }
 0x2a5   :  { %875 = vpow2.f32 %v477_v62 }
 0x2a6   :  { %877 = vpow2.f32 %v475_v61 }
 0x2af   :  { %v876_v63 = vpop.eup %875 }
 0x2b0   :  { %v481_v2 = vrot.slane %v876_v63, 7  ;;  %v878_v3 = vpop.eup %877 }
 0x2b2   :  { %v482_v4 = vsel %vm462_vm2, %v481_v2, %v878_v3 }
 0x2b3   :  { %v484_v5 = vsel %vm465_vm3, %v482_v4, 0.0 }
 0x2b4   :  { %485 = vadd.xlane.f32.xlu0 %v484_v5 }
 0x341   :  { %v486_v6 = vpop.xlane.xlu0 %485 }
 0x342   :  { %879 = vrcp.f32 %v486_v6 }
 0x34c   :  { %v880_v9 = vpop.eup %879 }
 0x34d   :  { %v489_v11 = vrot.slane %v880_v9, 1  ;;  %v492_v12 = vmul.f32 %v880_v9, %v878_v3 }
 0x34f   :  { %825 = vmatmul.mubr.msk.f32.vlgmr.msra.gmra.mrb[2].mxu0 %vm497_vm4, %v492_v12  ;;  %v493_v13 = vmul.f32 %v876_v63, %v489_v11 }
 0x350   :  { %859 = vmatpush3.bf16.msra.mxu0 %v858_v10  ;;  %840 = vmatprep.mubr.msk.f32.mxu0 %vm1006_vm0, %v1007_v1  ;;  %v764_v1 = vld [vmem:[%s1203_s8] ss:$0 sm:$0xff] }
 0x351   :  { %830 = vmatmul.mubr.msk.f32.vlgmr.msra.gmra.mrb[6].mxu1 %vm497_vm4, %v493_v13  ;;  %860 = vmatprep.subr.bf16.mxu0 %v1005_v0 }
 0x354   :  { %862 = vmatpush3.bf16.msra.mxu0 %v861_v16 }
 0x422   :  { %v567_v17 = vpop.f32.mrb[2].mxu0 }
 0x423   :  { %v826_v18 = vpop.f32.mrb[3].mxu0 }
 0x424   :  { %v643_v19 = vpop.f32.mrb[6].mxu1 }
 0x425   :  { %v660_v20 = vrot.slane %v643_v19, 7  ;;  %v831_v21 = vpop.f32.mrb[7].mxu1 }
 0x427   :  { %v661_v22 = vsel %vm462_vm2, %v660_v20, %v567_v17 }
 0x428   :  { %841 = vmatmul.mubr.msk.f32.vlgmr.msra.gmra.mrb[4].mxu0 %vm103_vm1, %v661_v22 }
 0x4fb   :  { %v730_v0 = vpop.f32.mrb[4].mxu0 }
 0x4fc   :  { %v731_v23 = vadd.f32 %v764_v1, %v730_v0  ;;  %v842_v24 = vpop.f32.mrb[5].mxu0 }
 0x4fe   :  { %735 = vst.msk [vmem:[#allocation10] sm:$0x3] %vm734_vm5, %v731_v23 }
 0x4ff   :  { %980 = shalt.err (!%p977_p8)
}
 0x500   :  { %s981_s0 = scalar_lea.hbm %s1204_s9, 32 }
 0x501   :  { %p982_p9 = scmp.ne.s32.totalorder %s1204_s9, %s981_s0  ;;  %p985_p10 = scmp.lt.u32.totalorder %s981_s0, %s1204_s9 }
 0x503   :  { %p987_p11 = pnand %p985_p10, %p982_p9 }
 0x505   :  { %990 = shalt.err (!%p987_p11)
}
 0x506   :  { %745 = dma.vmem_to_hbm [thread:$0]  %s743_s23, 32, %s1204_s9, [#allocation4]  }
 0x507   :  { %997 = dma.done.wait [#allocation4], 32  }
 0x508   :  { %998 = vsyncadd [#allocation4], 4294967264 }
 0x509   :  { %749 = vsyncpa [#allocation3], 1 }
 0x50a   :  { %750 = vsyncpa [#allocation6], 1 }
 0x50b   :  { %751 = vsyncpa [#allocation9], 1 }
 0x50c   :  { %752 = vsyncpa [#allocation4], 1 }

</bundles_post_ra>
